<compile_context>
chip_gen: v5e
topology: v5e:2x2
jax: 0.10.0
libtpu: 0.0.40
codegen_flags: <defaults>
</compile_context>

<pallas_src>
import jax
import jax.numpy as jnp
from jax.experimental import pallas as pl
from jax.experimental.pallas import tpu as pltpu


def _copy_kernel(x_ref, o_ref):
    # Identity hot path: straight VMEM tile copy.
    o_ref[...] = x_ref[...]


def _pick_lane_width(total: int) -> int:
    # Prefer the widest lane-dense last dimension that divides the element count.
    for w in (1024, 512, 256, 128):
        if total % w == 0:
            return w
    return 0


@jax.jit
def no_noise_forward(data: jax.Array) -> jax.Array:
    """Noiseless forward operator: returns `data` unchanged (same shape/dtype)."""
    total = data.size
    itemsize = jnp.dtype(data.dtype).itemsize
    lane = _pick_lane_width(total)

    if lane == 0:
        # Fallback for awkward element counts: whole-array single-block copy.
        # TODO(synk): pad/split to a 128-multiple instead for very large odd sizes.
        flat = data.reshape(1, total)
        out = pl.pallas_call(
            _copy_kernel,
            out_shape=jax.ShapeDtypeStruct(flat.shape, flat.dtype),
            input_output_aliases={0: 0},
        )(flat)
        return out.reshape(data.shape)

    rows = total // lane
    flat = data.reshape(rows, lane)

    # Target ~2 MiB per tile (in+out, double-buffered => ~8 MiB VMEM peak).
    target_tile_bytes = 2 * 1024 * 1024
    max_rows = max(16, (target_tile_bytes // (lane * itemsize)) // 16 * 16)
    tile_rows = rows if rows <= max_rows else max_rows
    grid = (pl.cdiv(rows, tile_rows),)

    out = pl.pallas_call(
        _copy_kernel,
        out_shape=jax.ShapeDtypeStruct((rows, lane), flat.dtype),
        grid_spec=pltpu.PrefetchScalarGridSpec(
            num_scalar_prefetch=0,
            grid=grid,
            in_specs=[pl.BlockSpec((tile_rows, lane), lambda i: (i, 0))],
            out_specs=pl.BlockSpec((tile_rows, lane), lambda i: (i, 0)),
        ),
        compiler_params=pltpu.CompilerParams(
            dimension_semantics=("parallel",),
        ),
        input_output_aliases={0: 0},
    )(flat)
    return out.reshape(data.shape)


if __name__ == "__main__":
    key = jax.random.PRNGKey(0)
    shape = (2, 4, 16, 16)
    x = jax.random.normal(key, shape, dtype=jnp.float32)
    # Regenerate the reference from the same key so the check does not depend
    # on reading the (potentially aliased/donated) input buffer after the call.
    expected = jax.random.normal(key, shape, dtype=jnp.float32)

    y = no_noise_forward(x)
    jax.block_until_ready(y)

    assert y.shape == shape and y.dtype == expected.dtype
    assert bool(jnp.all(y == expected))
    print("KERNEL_OK")
</pallas_src>

<mosaic_0001>
module attributes {stable_mosaic.version = 11 : i64} {
  func.func @_copy_kernel(%arg0: i32, %arg1: memref<2x1024xf32, #tpu.memory_space<vmem>>, %arg2: memref<2x1024xf32, #tpu.memory_space<vmem>>) attributes {dimension_semantics = [#tpu.dimension_semantics<parallel>], iteration_bounds = array<i64: 1>, scalar_prefetch = 0 : i64, scratch_operands = 0 : i64, tpu.core_type = #tpu.core_type<tc>, window_params = [{transform_indices = @transform_0, window_bounds = array<i64: 2, 1024>}, {transform_indices = @transform_1, window_bounds = array<i64: 2, 1024>}]} {
    %c0 = arith.constant 0 : index
    %c0_0 = arith.constant 0 : index
    %0 = vector.load %arg1[%c0, %c0_0] : memref<2x1024xf32, #tpu.memory_space<vmem>>, vector<2x1024xf32>
    %c0_1 = arith.constant 0 : index
    %c0_2 = arith.constant 0 : index
    %1 = vector.load %arg2[%c0_1, %c0_2] : memref<2x1024xf32, #tpu.memory_space<vmem>>, vector<2x1024xf32>
    tpu.vector_store %arg2[%c0_1, %c0_2], %0 {strides = array<i32>} : memref<2x1024xf32, #tpu.memory_space<vmem>>, vector<2x1024xf32>,
    return
  }
  func.func @transform_0(%arg0: i32) -> (i32, i32) {
    %c0_i32 = arith.constant 0 : i32
    %c0_i32_0 = arith.constant 0 : i32
    return %arg0, %c0_i32 : i32, i32
  }
  func.func @transform_1(%arg0: i32) -> (i32, i32) {
    %c0_i32 = arith.constant 0 : i32
    %c0_i32_0 = arith.constant 0 : i32
    return %arg0, %c0_i32 : i32, i32
  }
}

</mosaic_0001>

<bundles_post_ra>
// kernel: no_noise_forward.1
= control target key start
LH: loop header
LB: loop body
LE: loop exit
PB: predicated region body
PF: predicated region fallthrough
CT: control target
= control target key end

     0   :  { %s38_s0 = inlined_call_operand.vmem [shape: f32[2,1024], index: 0, kind: input, shape index: {}, may-alias: {0,1}]   ;;  %s39_s1 = inlined_call_operand.vmem [shape: f32[2,1024], index: 1, kind: output, shape index: {}, may-alias: {0,1}]  }
   0x1   :  { %v8_v0 = vld [vmem:[%s38_s0] sm:$0xff]  ;;  %v9_v1 = vld [vmem:[%s38_s0 + $0x8] sm:$0xff] }
   0x2   :  { %10 = vst [vmem:[%s39_s1] sm:$0xff] %v8_v0 }
   0x3   :  { %11 = vst [vmem:[%s39_s1 + $0x8] sm:$0xff] %v9_v1 }

</bundles_post_ra>
